<compile_context>
chip_gen: v5e
topology: v5e:2x2
jax: 0.10.0
libtpu: 0.0.40
codegen_flags: <defaults>
</compile_context>

<pallas_src>
import functools

import jax
import jax.numpy as jnp
from jax.experimental import pallas as pl
from jax.experimental.pallas import tpu as pltpu


# ----------------------------- Pallas kernel --------------------------------
def _jacfc_kernel(x_ref, w1_ref, b1_ref, w2_ref, b2_ref, o_ref):
    x = x_ref[...]                                                   # (tn, 9)
    h = jnp.dot(x, w1_ref[...],
                preferred_element_type=jnp.float32) + b1_ref[...]    # fc1
    h = jnp.maximum(h, 0.0)                                          # relu
    o_ref[...] = (jnp.dot(h, w2_ref[...],
                          preferred_element_type=jnp.float32)
                  + b2_ref[...]).astype(o_ref.dtype)                 # fc2


def _full_spec(shape):
    # Whole-array block, same block for every grid step (weights / biases).
    nd = len(shape)
    return pl.BlockSpec(shape, lambda i, _nd=nd: (0,) * _nd)


@functools.partial(jax.jit, static_argnames=("tn",))
def jacfc_pallas(triangles, params, *, tn=512):
    """Pallas implementation of JacFC.forward.

    triangles: (N, n_shapes * n_dims) float32
    params:    dict with w1 (9,64), b1 (1,64), w2 (64,32), b2 (1,32)
    Returns:   (N, 32) float32
    """
    N, K = triangles.shape
    tn = min(tn, N)
    w1, b1, w2, b2 = params["w1"], params["b1"], params["w2"], params["b2"]
    out_dim = w2.shape[1]

    out = pl.pallas_call(
        _jacfc_kernel,
        out_shape=jax.ShapeDtypeStruct((N, out_dim), triangles.dtype),
        grid_spec=pltpu.PrefetchScalarGridSpec(
            num_scalar_prefetch=0,
            grid=(pl.cdiv(N, tn),),
            in_specs=[
                pl.BlockSpec((tn, K), lambda i: (i, 0)),     # triangles rows
                _full_spec(w1.shape), _full_spec(b1.shape),  # fc1
                _full_spec(w2.shape), _full_spec(b2.shape),  # fc2
            ],
            out_specs=pl.BlockSpec((tn, out_dim), lambda i: (i, 0)),
        ),
        compiler_params=pltpu.CompilerParams(
            dimension_semantics=("parallel",)),
    )(triangles, w1, b1, w2, b2)
    return out


# ----------------------- deterministic parameter init -----------------------
def init_params(key, n_dims=3, n_shapes=3):
    ks = jax.random.split(key, 2)

    def lin(k, fan_in, fan_out):
        kw, kb = jax.random.split(k)
        lim = 1.0 / jnp.sqrt(fan_in)
        w = jax.random.uniform(kw, (fan_in, fan_out), jnp.float32, -lim, lim)
        b = jax.random.uniform(kb, (1, fan_out), jnp.float32, -lim, lim)
        return w, b

    w1, b1 = lin(ks[0], n_shapes * n_dims, 64)   # JacFC.fc1
    w2, b2 = lin(ks[1], 64, 32)                  # JacFC.fc2
    return {"w1": w1, "b1": b1, "w2": w2, "b2": b2}


# ------------------------------ pure-JAX reference ---------------------------
def jacfc_ref(triangles, params):
    h = jax.nn.relu(triangles @ params["w1"] + params["b1"][0])
    return h @ params["w2"] + params["b2"][0]


if __name__ == "__main__":
    key = jax.random.PRNGKey(0)
    k_x, k_p = jax.random.split(key)

    n_dims, n_shapes = 3, 3          # triangles flattened to 9 features
    N = 256                          # e.g. 256 faces
    triangles = jax.random.normal(k_x, (N, n_shapes * n_dims), jnp.float32)
    params = init_params(k_p, n_dims=n_dims, n_shapes=n_shapes)

    feat = jacfc_pallas(triangles, params, tn=128)
    feat = jax.block_until_ready(feat)
    assert feat.shape == (N, 32), feat.shape

    feat_ref = jacfc_ref(triangles, params)
    max_err = float(jnp.max(jnp.abs(feat - feat_ref)))
    assert jnp.allclose(feat, feat_ref, atol=1e-4, rtol=1e-4), max_err

    print("KERNEL_OK")
</pallas_src>

<mosaic_0001>
module attributes {stable_mosaic.version = 11 : i64} {
  func.func @_jacfc_kernel(%arg0: i32, %arg1: memref<128x9xf32, #tpu.memory_space<vmem>>, %arg2: memref<9x64xf32, #tpu.memory_space<vmem>>, %arg3: memref<1x64xf32, #tpu.memory_space<vmem>>, %arg4: memref<64x32xf32, #tpu.memory_space<vmem>>, %arg5: memref<1x32xf32, #tpu.memory_space<vmem>>, %arg6: memref<128x32xf32, #tpu.memory_space<vmem>>) attributes {dimension_semantics = [#tpu.dimension_semantics<parallel>], iteration_bounds = array<i64: 2>, scalar_prefetch = 0 : i64, scratch_operands = 0 : i64, tpu.core_type = #tpu.core_type<tc>, window_params = [{transform_indices = @transform_0, window_bounds = array<i64: 128, 9>}, {pipeline_mode = #tpu.pipeline_mode<synchronous>, transform_indices = @transform_1, window_bounds = array<i64: 9, 64>}, {pipeline_mode = #tpu.pipeline_mode<synchronous>, transform_indices = @transform_2, window_bounds = array<i64: 1, 64>}, {pipeline_mode = #tpu.pipeline_mode<synchronous>, transform_indices = @transform_3, window_bounds = array<i64: 64, 32>}, {pipeline_mode = #tpu.pipeline_mode<synchronous>, transform_indices = @transform_4, window_bounds = array<i64: 1, 32>}, {transform_indices = @transform_5, window_bounds = array<i64: 128, 32>}]} {
    %c0 = arith.constant 0 : index
    %c0_0 = arith.constant 0 : index
    %0 = vector.load %arg1[%c0, %c0_0] : memref<128x9xf32, #tpu.memory_space<vmem>>, vector<128x9xf32>
    %c0_1 = arith.constant 0 : index
    %c0_2 = arith.constant 0 : index
    %1 = vector.load %arg2[%c0_1, %c0_2] : memref<9x64xf32, #tpu.memory_space<vmem>>, vector<9x64xf32>
    %cst = arith.constant dense<0.000000e+00> : vector<128x64xf32>
    %2 = tpu.matmul %0, %1, %cst {dimension_numbers = #tpu.dot_dimension_numbers<[1], [0], [0], [1], [0, 0, 1, 1], [], []>} : vector<128x9xf32>, vector<9x64xf32>, vector<128x64xf32> -> vector<128x64xf32>
    %c0_3 = arith.constant 0 : index
    %c0_4 = arith.constant 0 : index
    %3 = vector.load %arg3[%c0_3, %c0_4] : memref<1x64xf32, #tpu.memory_space<vmem>>, vector<1x64xf32>
    %4 = vector.broadcast %3 : vector<1x64xf32> to vector<128x64xf32>
    %5 = arith.addf %2, %4 : vector<128x64xf32>
    %cst_5 = arith.constant 0.000000e+00 : f32
    %6 = vector.broadcast %cst_5 : f32 to vector<128x64xf32>
    %7 = arith.maximumf %5, %6 : vector<128x64xf32>
    %c0_6 = arith.constant 0 : index
    %c0_7 = arith.constant 0 : index
    %8 = vector.load %arg4[%c0_6, %c0_7] : memref<64x32xf32, #tpu.memory_space<vmem>>, vector<64x32xf32>
    %cst_8 = arith.constant dense<0.000000e+00> : vector<128x32xf32>
    %9 = tpu.matmul %7, %8, %cst_8 {dimension_numbers = #tpu.dot_dimension_numbers<[1], [0], [0], [1], [0, 0, 1, 1], [], []>} : vector<128x64xf32>, vector<64x32xf32>, vector<128x32xf32> -> vector<128x32xf32>
    %c0_9 = arith.constant 0 : index
    %c0_10 = arith.constant 0 : index
    %10 = vector.load %arg5[%c0_9, %c0_10] : memref<1x32xf32, #tpu.memory_space<vmem>>, vector<1x32xf32>
    %11 = vector.broadcast %10 : vector<1x32xf32> to vector<128x32xf32>
    %12 = arith.addf %9, %11 : vector<128x32xf32>
    %c0_11 = arith.constant 0 : index
    %c0_12 = arith.constant 0 : index
    %13 = vector.load %arg6[%c0_11, %c0_12] : memref<128x32xf32, #tpu.memory_space<vmem>>, vector<128x32xf32>
    tpu.vector_store %arg6[%c0_11, %c0_12], %12 {strides = array<i32>} : memref<128x32xf32, #tpu.memory_space<vmem>>, vector<128x32xf32>,
    return
  }
  func.func @transform_0(%arg0: i32) -> (i32, i32) {
    %c0_i32 = arith.constant 0 : i32
    %c0_i32_0 = arith.constant 0 : i32
    return %arg0, %c0_i32 : i32, i32
  }
  func.func @transform_1(%arg0: i32) -> (i32, i32) {
    %c0_i32 = arith.constant 0 : i32
    %c0_i32_0 = arith.constant 0 : i32
    %c0_i32_1 = arith.constant 0 : i32
    return %c0_i32, %c0_i32_0 : i32, i32
  }
  func.func @transform_2(%arg0: i32) -> (i32, i32) {
    %c0_i32 = arith.constant 0 : i32
    %c0_i32_0 = arith.constant 0 : i32
    %c0_i32_1 = arith.constant 0 : i32
    return %c0_i32, %c0_i32_0 : i32, i32
  }
  func.func @transform_3(%arg0: i32) -> (i32, i32) {
    %c0_i32 = arith.constant 0 : i32
    %c0_i32_0 = arith.constant 0 : i32
    %c0_i32_1 = arith.constant 0 : i32
    return %c0_i32, %c0_i32_0 : i32, i32
  }
  func.func @transform_4(%arg0: i32) -> (i32, i32) {
    %c0_i32 = arith.constant 0 : i32
    %c0_i32_0 = arith.constant 0 : i32
    %c0_i32_1 = arith.constant 0 : i32
    return %c0_i32, %c0_i32_0 : i32, i32
  }
  func.func @transform_5(%arg0: i32) -> (i32, i32) {
    %c0_i32 = arith.constant 0 : i32
    %c0_i32_0 = arith.constant 0 : i32
    return %arg0, %c0_i32 : i32, i32
  }
}

</mosaic_0001>

<bundles_post_ra>
// kernel: jacfc_pallas.1
= control target key start
LH: loop header
LB: loop body
LE: loop exit
PB: predicated region body
PF: predicated region fallthrough
CT: control target
= control target key end

     0   :  { %s685_s18 = smov 0   ;;  %s847_s0 = inlined_call_operand.vmem [shape: f32[256,9], index: 0, kind: input, shape index: {}]   ;;  %s848_s1 = inlined_call_operand.vmem [shape: f32[9,64], index: 1, kind: input, shape index: {}]   ;;  %s849_s2 = inlined_call_operand.vmem [shape: f32[1,64], index: 2, kind: input, shape index: {}]   ;;  %s850_s3 = inlined_call_operand.vmem [shape: f32[64,32], index: 3, kind: input, shape index: {}]   ;;  %s851_s4 = inlined_call_operand.vmem [shape: f32[1,32], index: 4, kind: input, shape index: {}]   ;;  %s852_s5 = inlined_call_operand.vmem [shape: f32[256,32], index: 5, kind: output, shape index: {}]  }
   0x1 LB: > { %s583_s19 = sadd.s32 4294967295, %s653_s18   ;;  %p587_p0 = scmp.ge.s32.totalorder %s653_s18, 1  ;;  %s653_s18 = sphi %s685_s18, %s15_s18  }
   0x2   : > { %p188_p1 = scmp.lt.s32.totalorder %s653_s18, 3 }
   0x4   : > { %p189_p2 = pnand %p587_p0, %p188_p1 }
   0x5   : > { %s588_s24 = sshll.u32 (!%p189_p2), %s583_s19, 4 }
   0x6   : > { %192 = sbr.rel (%p189_p2) target bundleno = 400 (0x190), region = 40  ;;  %p217_p3 = scmp.lt.s32.totalorder (!%p189_p2), %s588_s24, 31 }
   0xb   : > { %v245_v0 = vld [vmem:[%s848_s1 + $0x8] sm:$0x1]  ;;  %vm299_vm0 = vcmask 1040384   ;;  %v244_v1 = vld [vmem:[%s848_s1] sm:$0xff]  ;;  %s854_s24 = smov (!%p217_p3, %s588_s24), 31  ;;  %vm250_vm1 = vcmask 72704  }
   0xc   : > { %592 = vmatpush.msk.msra.mxu0 %vm299_vm0, %v245_v0  ;;  %627 = vmatpush.msk.msra.mxu3 %vm299_vm0, %v245_v0  ;;  %s589_s25 = sshll.u32 %s854_s24, 3  ;;  %v391_v12 = vld [vmem:[%s850_s3 + $0x38] sm:$0xff]  ;;  %v390_v13 = vld [vmem:[%s850_s3 + $0x30] sm:$0xff]  ;;  %v389_v14 = vld [vmem:[%s850_s3 + $0x28] sm:$0xff]  ;;  %vm396_vm2 = vcmask 523264   ;;  %vm510_vm3 = vcmask 261120  }
   0xd   : > { %s707_s28 = scalar_lea.vmem %s847_s0, %s589_s25  ;;  %453 = vmatpush.msra.mxu1 %v391_v12  ;;  %629 = vmatpush.msra.mxu2 %v391_v12  ;;  %v388_v16 = vld [vmem:[%s850_s3 + $0x20] sm:$0xff]  ;;  %v387_v18 = vld [vmem:[%s850_s3 + $0x18] sm:$0xff]  ;;  %v386_v23 = vld [vmem:[%s850_s3 + $0x10] sm:$0xff]  ;;  %s810_s29 = scalar_lea.vmem %s852_s5, %s589_s25 }
   0xe   : > { %318 = vmatpush.msra.mxu0 %v244_v1  ;;  %628 = vmatpush.msra.mxu3 %v244_v1  ;;  %v228_v2 = vld [vmem:[%s707_s28] sm:$0xff]  ;;  %v229_v3 = vld [vmem:[%s707_s28 + $0x8] sm:$0xff]  ;;  %v230_v4 = vld [vmem:[%s707_s28 + $0x10] sm:$0xff] }
   0xf   : > { %593 = vmatmul.msk.f32.vlgmr.msra.gmra.mxu0 %vm250_vm1, %v228_v2  ;;  %v231_v5 = vld [vmem:[%s707_s28 + $0x18] sm:$0xff]  ;;  %v232_v6 = vld [vmem:[%s707_s28 + $0x20] sm:$0xff]  ;;  %v237_v7 = vld [vmem:[%s707_s28 + $0x48] sm:$0xff]  ;;  %454 = vmatpush.msra.mxu1 %v390_v13 }
  0x10   : > { %602 = vmatmul.msk.f32.vlgmr.msra.gmra.mxu3 %vm250_vm1, %v237_v7  ;;  %v233_v8 = vld [vmem:[%s707_s28 + $0x28] sm:$0xff]  ;;  %v238_v9 = vld [vmem:[%s707_s28 + $0x50] sm:$0xff]  ;;  %v239_v11 = vld [vmem:[%s707_s28 + $0x58] sm:$0xff]  ;;  %630 = vmatpush.msra.mxu2 %v390_v13 }
  0x11   : > { %v234_v10 = vld [vmem:[%s707_s28 + $0x30] sm:$0xff]  ;;  %v235_v15 = vld [vmem:[%s707_s28 + $0x38] sm:$0xff]  ;;  %v240_v17 = vld [vmem:[%s707_s28 + $0x60] sm:$0xff]  ;;  %455 = vmatpush.msra.mxu1 %v389_v14 }
  0x12   : > { %631 = vmatpush.msra.mxu2 %v389_v14  ;;  %v236_v19 = vld [vmem:[%s707_s28 + $0x40] sm:$0xff]  ;;  %v241_v20 = vld [vmem:[%s707_s28 + $0x68] sm:$0xff]  ;;  %v242_v21 = vld [vmem:[%s707_s28 + $0x70] sm:$0xff] }
  0x13   : > { %456 = vmatpush.msra.mxu1 %v388_v16  ;;  %v243_v22 = vld [vmem:[%s707_s28 + $0x78] sm:$0xff]  ;;  %v385_v24 = vld [vmem:[%s850_s3 + $0x8] sm:$0xff]  ;;  %v384_v25 = vld [vmem:[%s850_s3] sm:$0xff] }
  0x14   : > { %632 = vmatpush.msra.mxu2 %v388_v16  ;;  %v768_v26 = vld [vmem:[%s849_s2] ss:$0 sm:$0xff] }
  0x15   : > { %457 = vmatpush.msra.mxu1 %v387_v18 }
  0x16   : > { %633 = vmatpush.msra.mxu2 %v387_v18 }
  0x17   : > { %594 = vmatmul.msk.f32.gmra.mxu0 %vm250_vm1, %v229_v3  ;;  %458 = vmatpush.msra.mxu1 %v386_v23 }
  0x18   : > { %603 = vmatmul.msk.f32.gmra.mxu3 %vm250_vm1, %v238_v9  ;;  %634 = vmatpush.msra.mxu2 %v386_v23 }
  0x19   : > { %459 = vmatpush.msra.mxu1 %v385_v24 }
  0x1a   : > { %635 = vmatpush.msra.mxu2 %v385_v24 }
  0x1b   : > { %460 = vmatpush.msra.mxu1 %v384_v25 }
  0x1c   : > { %636 = vmatpush.msra.mxu2 %v384_v25 }
  0x1f   : > { %595 = vmatmul.msk.f32.gmra.mxu0 %vm250_vm1, %v230_v4 }
  0x20   : > { %604 = vmatmul.msk.f32.gmra.mxu3 %vm250_vm1, %v239_v11  ;;  %v646_v11 = vld [vmem:[%s851_s4] ss:$0 sm:$0xff] }
  0x27   : > { %596 = vmatmul.msk.f32.gmra.mxu0 %vm250_vm1, %v231_v5 }
  0x28   : > { %605 = vmatmul.msk.f32.gmra.mxu3 %vm250_vm1, %v240_v17 }
  0x2f   : > { %597 = vmatmul.msk.f32.gmra.mxu0 %vm250_vm1, %v232_v6 }
  0x30   : > { %606 = vmatmul.msk.f32.gmra.mxu3 %vm250_vm1, %v241_v20 }
  0x37   : > { %598 = vmatmul.msk.f32.gmra.mxu0 %vm250_vm1, %v233_v8 }
  0x38   : > { %607 = vmatmul.msk.f32.gmra.mxu3 %vm250_vm1, %v242_v21 }
  0x3f   : > { %599 = vmatmul.msk.f32.gmra.mxu0 %vm250_vm1, %v234_v10 }
  0x40   : > { %608 = vmatmul.msk.f32.gmra.mxu3 %vm250_vm1, %v243_v22 }
  0x47   : > { %600 = vmatmul.msk.f32.gmra.mxu0 %vm250_vm1, %v235_v15 }
  0x4f   : > { %601 = vmatmul.msk.f32.gmra.mxu0 %vm250_vm1, %v236_v19 }
  0x8c   : > { %v320_v27 = vpop.f32.mrf.mxu0 }
  0x8d   : > { %v321_v28 = vadd.f32 %v768_v26, %v320_v27 }
  0x8f   : > { %v368_v29 = vmax.f32 %v321_v28, 0.0 }
  0x91   : > { %609 = vmatmul.msk.f32.vlgmr.msra.gmra.mxu1 %vm396_vm2, %v368_v29 }
  0x93   : > { %v347_v48 = vpop.f32.mrf.mxu3 }
  0x94   : > { %v323_v30 = vpop.f32.mrf.mxu0  ;;  %v348_v56 = vadd.f32 %v768_v26, %v347_v48 }
  0x95   : > { %v324_v31 = vadd.f32 %v768_v26, %v323_v30 }
  0x96   : > { %v377_v57 = vmax.f32 %v348_v56, 0.0 }
  0x97   : > { %v369_v32 = vmax.f32 %v324_v31, 0.0 }
  0x99   : > { %610 = vmatmul.msk.f32.gmra.mxu1 %vm396_vm2, %v369_v32 }
  0x9b   : > { %v350_v53 = vpop.f32.mrf.mxu3 }
  0x9c   : > { %v326_v33 = vpop.f32.mrf.mxu0  ;;  %v351_v59 = vadd.f32 %v768_v26, %v350_v53 }
  0x9d   : > { %v327_v34 = vadd.f32 %v768_v26, %v326_v33 }
  0x9e   : > { %v378_v60 = vmax.f32 %v351_v59, 0.0 }
  0x9f   : > { %v370_v35 = vmax.f32 %v327_v34, 0.0 }
  0xa1   : > { %611 = vmatmul.msk.f32.gmra.mxu1 %vm396_vm2, %v370_v35 }
  0xa3   : > { %v353_v58 = vpop.f32.mrf.mxu3 }
  0xa4   : > { %v329_v36 = vpop.f32.mrf.mxu0  ;;  %v354_v62 = vadd.f32 %v768_v26, %v353_v58 }
  0xa5   : > { %v330_v37 = vadd.f32 %v768_v26, %v329_v36 }
  0xa6   : > { %v379_v63 = vmax.f32 %v354_v62, 0.0 }
  0xa7   : > { %v371_v38 = vmax.f32 %v330_v37, 0.0 }
  0xa9   : > { %612 = vmatmul.msk.f32.gmra.mxu1 %vm396_vm2, %v371_v38 }
  0xab   : > { %v356_v61 = vpop.f32.mrf.mxu3 }
  0xac   : > { %v332_v39 = vpop.f32.mrf.mxu0  ;;  %v357_v0 = vadd.f32 %v768_v26, %v356_v61 }
  0xad   : > { %v333_v40 = vadd.f32 %v768_v26, %v332_v39 }
  0xae   : > { %v380_v2 = vmax.f32 %v357_v0, 0.0 }
  0xaf   : > { %v372_v41 = vmax.f32 %v333_v40, 0.0 }
  0xb1   : > { %613 = vmatmul.msk.f32.gmra.mxu1 %vm396_vm2, %v372_v41 }
  0xb3   : > { %v359_v1 = vpop.f32.mrf.mxu3 }
  0xb4   : > { %v335_v42 = vpop.f32.mrf.mxu0  ;;  %v360_v3 = vadd.f32 %v768_v26, %v359_v1 }
  0xb5   : > { %v336_v43 = vadd.f32 %v768_v26, %v335_v42 }
  0xb6   : > { %v381_v5 = vmax.f32 %v360_v3, 0.0 }
  0xb7   : > { %v373_v44 = vmax.f32 %v336_v43, 0.0 }
  0xb9   : > { %614 = vmatmul.msk.f32.gmra.mxu1 %vm396_vm2, %v373_v44 }
  0xbb   : > { %v362_v4 = vpop.f32.mrf.mxu3 }
  0xbc   : > { %v338_v45 = vpop.f32.mrf.mxu0  ;;  %v363_v6 = vadd.f32 %v768_v26, %v362_v4 }
  0xbd   : > { %v339_v46 = vadd.f32 %v768_v26, %v338_v45 }
  0xbe   : > { %v382_v7 = vmax.f32 %v363_v6, 0.0 }
  0xbf   : > { %v374_v47 = vmax.f32 %v339_v46, 0.0 }
  0xc1   : > { %615 = vmatmul.msk.f32.gmra.mxu1 %vm396_vm2, %v374_v47 }
  0xc3   : > { %v365_v8 = vpop.f32.mrf.mxu3 }
  0xc4   : > { %v341_v49 = vpop.f32.mrf.mxu0  ;;  %v366_v9 = vadd.f32 %v768_v26, %v365_v8 }
  0xc5   : > { %v342_v50 = vadd.f32 %v768_v26, %v341_v49 }
  0xc6   : > { %v383_v10 = vmax.f32 %v366_v9, 0.0 }
  0xc7   : > { %v375_v51 = vmax.f32 %v342_v50, 0.0 }
  0xc9   : > { %616 = vmatmul.msk.f32.gmra.mxu1 %vm396_vm2, %v375_v51 }
  0xcc   : > { %v344_v52 = vpop.f32.mrf.mxu0 }
  0xcd   : > { %v345_v54 = vadd.f32 %v768_v26, %v344_v52 }
  0xcf   : > { %v376_v55 = vmax.f32 %v345_v54, 0.0 }
  0xd1   : > { %617 = vmatmul.msk.f32.vlgmr.msra.gmra.mxu2 %vm396_vm2, %v376_v55 }
  0xd9   : > { %618 = vmatmul.msk.f32.gmra.mxu2 %vm396_vm2, %v377_v57 }
  0xe1   : > { %619 = vmatmul.msk.f32.gmra.mxu2 %vm396_vm2, %v378_v60 }
  0xe9   : > { %620 = vmatmul.msk.f32.gmra.mxu2 %vm396_vm2, %v379_v63 }
  0xf1   : > { %621 = vmatmul.msk.f32.gmra.mxu2 %vm396_vm2, %v380_v2 }
  0xf9   : > { %622 = vmatmul.msk.f32.gmra.mxu2 %vm396_vm2, %v381_v5 }
 0x101   : > { %623 = vmatmul.msk.f32.gmra.mxu2 %vm396_vm2, %v382_v7 }
 0x109   : > { %624 = vmatmul.msk.f32.gmra.mxu2 %vm396_vm2, %v383_v10 }
 0x10e   : > { %v462_v12 = vpop.f32.mrf.mxu1 }
 0x10f   : > { %v463_v13 = vadd.f32 %v646_v11, %v462_v12 }
 0x111   : > { %511 = vst.msk [vmem:[%s810_s29] sm:$0xff] %vm510_vm3, %v463_v13 }
 0x116   : > { %v465_v14 = vpop.f32.mrf.mxu1 }
 0x117   : > { %v466_v15 = vadd.f32 %v646_v11, %v465_v14 }
 0x119   : > { %512 = vst.msk [vmem:[%s810_s29 + $0x8] sm:$0xff] %vm510_vm3, %v466_v15 }
 0x11e   : > { %v468_v16 = vpop.f32.mrf.mxu1 }
 0x11f   : > { %v469_v17 = vadd.f32 %v646_v11, %v468_v16 }
 0x121   : > { %513 = vst.msk [vmem:[%s810_s29 + $0x10] sm:$0xff] %vm510_vm3, %v469_v17 }
 0x126   : > { %v471_v18 = vpop.f32.mrf.mxu1 }
 0x127   : > { %v472_v19 = vadd.f32 %v646_v11, %v471_v18 }
 0x129   : > { %514 = vst.msk [vmem:[%s810_s29 + $0x18] sm:$0xff] %vm510_vm3, %v472_v19 }
 0x12e   : > { %v474_v20 = vpop.f32.mrf.mxu1 }
 0x12f   : > { %v475_v21 = vadd.f32 %v646_v11, %v474_v20 }
 0x131   : > { %515 = vst.msk [vmem:[%s810_s29 + $0x20] sm:$0xff] %vm510_vm3, %v475_v21 }
 0x136   : > { %v477_v22 = vpop.f32.mrf.mxu1 }
 0x137   : > { %v478_v23 = vadd.f32 %v646_v11, %v477_v22 }
 0x139   : > { %516 = vst.msk [vmem:[%s810_s29 + $0x28] sm:$0xff] %vm510_vm3, %v478_v23 }
 0x13e   : > { %v480_v24 = vpop.f32.mrf.mxu1 }
 0x13f   : > { %v481_v25 = vadd.f32 %v646_v11, %v480_v24 }
 0x141   : > { %517 = vst.msk [vmem:[%s810_s29 + $0x30] sm:$0xff] %vm510_vm3, %v481_v25 }
 0x146   : > { %v483_v26 = vpop.f32.mrf.mxu1 }
 0x147   : > { %v484_v27 = vadd.f32 %v646_v11, %v483_v26 }
 0x149   : > { %518 = vst.msk [vmem:[%s810_s29 + $0x38] sm:$0xff] %vm510_vm3, %v484_v27 }
 0x154   : > { %v486_v28 = vpop.f32.mrf.mxu2 }
 0x155   : > { %v487_v29 = vadd.f32 %v646_v11, %v486_v28 }
 0x157   : > { %519 = vst.msk [vmem:[%s810_s29 + $0x40] sm:$0xff] %vm510_vm3, %v487_v29 }
 0x15c   : > { %v489_v30 = vpop.f32.mrf.mxu2 }
 0x15d   : > { %v490_v31 = vadd.f32 %v646_v11, %v489_v30 }
 0x15f   : > { %520 = vst.msk [vmem:[%s810_s29 + $0x48] sm:$0xff] %vm510_vm3, %v490_v31 }
 0x164   : > { %v492_v32 = vpop.f32.mrf.mxu2 }
 0x165   : > { %v493_v33 = vadd.f32 %v646_v11, %v492_v32 }
 0x167   : > { %521 = vst.msk [vmem:[%s810_s29 + $0x50] sm:$0xff] %vm510_vm3, %v493_v33 }
 0x16c   : > { %v495_v34 = vpop.f32.mrf.mxu2 }
 0x16d   : > { %v496_v35 = vadd.f32 %v646_v11, %v495_v34 }
 0x16f   : > { %522 = vst.msk [vmem:[%s810_s29 + $0x58] sm:$0xff] %vm510_vm3, %v496_v35 }
 0x174   : > { %v498_v36 = vpop.f32.mrf.mxu2 }
 0x175   : > { %v499_v37 = vadd.f32 %v646_v11, %v498_v36 }
 0x177   : > { %523 = vst.msk [vmem:[%s810_s29 + $0x60] sm:$0xff] %vm510_vm3, %v499_v37 }
 0x17c   : > { %v501_v38 = vpop.f32.mrf.mxu2 }
 0x17d   : > { %v502_v39 = vadd.f32 %v646_v11, %v501_v38 }
 0x17f   : > { %524 = vst.msk [vmem:[%s810_s29 + $0x68] sm:$0xff] %vm510_vm3, %v502_v39 }
 0x184   : > { %v504_v40 = vpop.f32.mrf.mxu2 }
 0x185   : > { %v505_v41 = vadd.f32 %v646_v11, %v504_v40 }
 0x187   : > { %525 = vst.msk [vmem:[%s810_s29 + $0x70] sm:$0xff] %vm510_vm3, %v505_v41 }
 0x18c   : > { %v507_v42 = vpop.f32.mrf.mxu2 }
 0x18d   : > { %v508_v43 = vadd.f32 %v646_v11, %v507_v42 }
 0x18f   : > { %526 = vst.msk [vmem:[%s810_s29 + $0x78] sm:$0xff] %vm510_vm3, %v508_v43 }
 0x190 PF: > { %s15_s18 = sadd.s32 1, %s653_s18  }
 0x191   : > { %p12_p4 = scmp.ge.s32.totalorder %s15_s18, 4  }
 0x193   :  { %14 = sbr.rel (!%p12_p4) target bundleno = 1 (0x1), region = 70 }

</bundles_post_ra>
